<compile_context>
chip_gen: v6e
topology: v6e:2x2x1
jax: 0.10.0
libtpu: 0.0.40
codegen_flags: <defaults>
</compile_context>

<pallas_src>
import functools

import jax
import jax.numpy as jnp
from jax.experimental import pallas as pl
from jax.experimental.pallas import tpu as pltpu

N_QUBITS = 5
DIM = 2 ** N_QUBITS        # 32
N_LAYERS = 3               # (trainable, encoding) pairs
N_BLOCKS = N_LAYERS + 1    # + final trainable block (parameters_[-1])
BATCH = 8
LANE = 128                 # TPU lane width


# ---------------------------------------------------------------------------
# Pallas kernel: whole circuit (all trainable blocks + encodings + PauliZ(0)
# measurement) in a single invocation; layer loop statically unrolled.
#   m_ref   : [n_blocks, 2*dim, 2*dim]  packed real block unitaries
#   enc_ref : [2*dim, bt]               rows 0..dim-1 = cos(phase), dim.. = sin
#   out_ref : [1, bt]                   <PauliZ(0)> per sample (lane-dense)
# ---------------------------------------------------------------------------
def qmodel_kernel(m_ref, enc_ref, out_ref, *, n_blocks, dim):
    bt = enc_ref.shape[1]
    er = enc_ref[0:dim, :]           # [dim, bt]   cos(phase)
    ei = enc_ref[dim:2 * dim, :]     # [dim, bt]   sin(phase)

    # Trainable block 0 applied to |0...0>:  M_0 @ e_0 == column 0 of M_0.
    m0 = m_ref[0]                    # [2*dim, 2*dim]
    s = m0[:, 0:1]                   # [2*dim, 1]; lanes broadcast on 1st encode

    # Remaining (data-encoding -> trainable) pairs, statically unrolled.
    for l in range(1, n_blocks):
        re = s[0:dim, :]             # sublane-aligned slices (offset 32)
        im = s[dim:2 * dim, :]
        # Data_encoding_curcuit_block: per-sample diagonal phase (VPU, lane-full)
        nre = re * er - im * ei
        nim = re * ei + im * er
        # Trainable_circuit_block: one fused real block matmul (MXU, N = bt)
        s = jnp.dot(m_ref[l],
                    jnp.concatenate([nre, nim], axis=0),
                    preferred_element_type=jnp.float32)

    if s.shape[1] != bt:             # only hit when there are no encode layers
        s = jnp.broadcast_to(s, (2 * dim, bt))

    # Measurement: <PauliZ(wire 0)> ; wire 0 = MSB, so +1 for the first half
    # of the basis indices and -1 for the second half (sublane-aligned split).
    re = s[0:dim, :]
    im = s[dim:2 * dim, :]
    prob = re * re + im * im
    half = dim // 2
    out_ref[...] = (jnp.sum(prob[:half, :], axis=0, keepdims=True)
                    - jnp.sum(prob[half:, :], axis=0, keepdims=True))


def quantum_forward(m_blocks, enc_packed, *, batch_tile=None):
    """enc_packed: [2*dim, batch] (rows = [cos(phase); sin(phase)])."""
    n_blocks, two_dim, _ = m_blocks.shape
    dim = two_dim // 2
    two_dim_e, batch = enc_packed.shape
    assert two_dim_e == two_dim

    # Pad batch (lane axis) to a multiple of 128 so every block is lane-dense.
    padded = max(LANE, -(-batch // LANE) * LANE)

    if batch_tile is None:
        # Biggest tile that divides the padded batch (amortizes ~0.35us/step),
        # but keep >= 2 tiles when possible so both v7x TensorCores get work.
        batch_tile = next(t for t in (512, 256, 128) if padded % t == 0)
        if padded // batch_tile == 1 and batch_tile >= 256:
            batch_tile //= 2
    assert batch_tile % LANE == 0 and padded % batch_tile == 0

    if padded != batch:
        enc_packed = jnp.pad(enc_packed, ((0, 0), (0, padded - batch)))

    kern = functools.partial(qmodel_kernel, n_blocks=n_blocks, dim=dim)
    out = pl.pallas_call(
        kern,
        out_shape=jax.ShapeDtypeStruct((1, padded), jnp.float32),
        grid=(padded // batch_tile,),
        in_specs=[
            # grid-invariant packed block unitaries (tiny: n_blocks*64*64 f32)
            pl.BlockSpec((n_blocks, two_dim, two_dim), lambda b: (0, 0, 0)),
            # per-sample encoding diagonals, batch on lanes
            pl.BlockSpec((two_dim, batch_tile), lambda b: (0, b)),
        ],
        out_specs=pl.BlockSpec((1, batch_tile), lambda b: (0, b)),
        compiler_params=pltpu.CompilerParams(
            dimension_semantics=("parallel",)),   # batch tiles are independent
    )(m_blocks, enc_packed)
    return out[0, :batch]


# ---------------------------------------------------------------------------
# Plain-JAX glue: build the trainable-block unitaries, the fused real block
# matrices, the packed encoding diagonals (parameter setup, not the hot path).
# ---------------------------------------------------------------------------
def _ry(theta):
    c = jnp.cos(theta / 2)
    s = jnp.sin(theta / 2)
    return jnp.array([[c, -s], [s, c]], dtype=jnp.complex64)


def _rz(phi):
    return jnp.array([[jnp.exp(-1j * phi / 2), 0.0],
                      [0.0, jnp.exp(1j * phi / 2)]], dtype=jnp.complex64)


def _cnot_matrix(n, c, t):
    dim = 2 ** n
    idx = jnp.arange(dim)
    ctrl = (idx >> (n - 1 - c)) & 1
    new_idx = jnp.where(ctrl == 1, idx ^ (1 << (n - 1 - t)), idx)
    m = jnp.zeros((dim, dim), dtype=jnp.complex64)
    return m.at[new_idx, idx].set(1.0)


def trainable_block_unitary(params_block, n_qubits):
    # params_block: [n_qubits, 2] = (theta_ry, phi_rz) per qubit
    u = jnp.array([[1.0 + 0.0j]], dtype=jnp.complex64)
    for q in range(n_qubits):
        g = _rz(params_block[q, 1]) @ _ry(params_block[q, 0])
        u = jnp.kron(u, g)                      # wire 0 = leftmost (MSB)
    for q in range(n_qubits):                   # entangling CNOT ring
        u = _cnot_matrix(n_qubits, q, (q + 1) % n_qubits) @ u
    return u


def build_block_matrices(u_blocks):
    # U @ (re + i*im) as a real block matmul on packed columns [re ; im]:
    #   [[U_re, -U_im], [U_im, U_re]] @ [re ; im]
    ur = jnp.real(u_blocks).astype(jnp.float32)
    ui = jnp.imag(u_blocks).astype(jnp.float32)
    top = jnp.concatenate([ur, -ui], axis=2)
    bot = jnp.concatenate([ui, ur], axis=2)
    return jnp.concatenate([top, bot], axis=1)   # [N_BLOCKS, 2*DIM, 2*DIM]


def encoding_diagonal(x, n_qubits):
    # RZ(x_q) on every qubit -> diagonal phase exp(i * phases[b, i])
    dim = 2 ** n_qubits
    idx = jnp.arange(dim)
    bits = (idx[None, :] >> (n_qubits - 1 - jnp.arange(n_qubits)[:, None])) & 1
    signs = jnp.where(bits == 1, 0.5, -0.5).astype(jnp.float32)   # [n, dim]
    phases = x @ signs                                            # [B, dim]
    return jnp.cos(phases), jnp.sin(phases)


def pack_encoding(enc_re, enc_im):
    # one lane-dense [2*DIM, B] operand -> a single DMA stream into the kernel
    return jnp.concatenate([enc_re.T, enc_im.T], axis=0)


def reference_forward(u_blocks, enc_re, enc_im, n_qubits):
    # pure-JAX reference of the same data-reuploading circuit
    b = enc_re.shape[0]
    dim = 2 ** n_qubits
    state = jnp.zeros((b, dim), dtype=jnp.complex64).at[:, 0].set(1.0)
    enc = enc_re + 1j * enc_im
    for l in range(u_blocks.shape[0] - 1):
        state = state @ u_blocks[l].T
        state = state * enc
    state = state @ u_blocks[-1].T
    probs = jnp.abs(state) ** 2
    idx = jnp.arange(dim)
    z = jnp.where(((idx >> (n_qubits - 1)) & 1) == 0, 1.0, -1.0)
    return probs @ z


# TODO(synk): qml.fourier.coefficients (Measureable_quantum_model) has no
# Pallas equivalent; only the circuit forward / expectation is implemented.

if __name__ == "__main__":
    key = jax.random.PRNGKey(0)
    k_params, k_x = jax.random.split(key)
    parameters = jax.random.normal(k_params, (N_BLOCKS, N_QUBITS, 2),
                                   dtype=jnp.float32)
    x = jax.random.normal(k_x, (BATCH, N_QUBITS), dtype=jnp.float32)

    u_blocks = jnp.stack([trainable_block_unitary(parameters[i], N_QUBITS)
                          for i in range(N_BLOCKS)])
    m_blocks = build_block_matrices(u_blocks)        # [4, 64, 64] f32
    enc_re, enc_im = encoding_diagonal(x, N_QUBITS)  # [8, 32] f32 each
    enc_packed = pack_encoding(enc_re, enc_im)       # [64, 8] f32

    out = quantum_forward(m_blocks, enc_packed)      # [8]
    out = jax.block_until_ready(out)

    ref = reference_forward(u_blocks, enc_re, enc_im, N_QUBITS)
    assert jnp.allclose(out, ref, atol=1e-4), (out, ref)
    print("KERNEL_OK")
</pallas_src>

<mosaic_0001>
module attributes {stable_mosaic.version = 11 : i64} {
  func.func @qmodel_kernel(%arg0: i32, %arg1: memref<4x64x64xf32, #tpu.memory_space<vmem>>, %arg2: memref<64x128xf32, #tpu.memory_space<vmem>>, %arg3: memref<1x128xf32, #tpu.memory_space<vmem>>) attributes {dimension_semantics = [#tpu.dimension_semantics<parallel>], iteration_bounds = array<i64: 1>, scalar_prefetch = 0 : i64, scratch_operands = 0 : i64, tpu.core_type = #tpu.core_type<tc>, window_params = [{pipeline_mode = #tpu.pipeline_mode<synchronous>, transform_indices = @transform_0, window_bounds = array<i64: 4, 64, 64>}, {transform_indices = @transform_1, window_bounds = array<i64: 64, 128>}, {transform_indices = @transform_2, window_bounds = array<i64: 1, 128>}]} {
    %c0 = arith.constant 0 : index
    %c0_0 = arith.constant 0 : index
    %0 = vector.load %arg2[%c0, %c0_0] : memref<64x128xf32, #tpu.memory_space<vmem>>, vector<32x128xf32>
    %c32 = arith.constant 32 : index
    %c0_1 = arith.constant 0 : index
    %1 = vector.load %arg2[%c32, %c0_1] : memref<64x128xf32, #tpu.memory_space<vmem>>, vector<32x128xf32>
    %c0_2 = arith.constant 0 : index
    %c0_3 = arith.constant 0 : index
    %c0_4 = arith.constant 0 : index
    %2 = vector.load %arg1[%c0_2, %c0_3, %c0_4] : memref<4x64x64xf32, #tpu.memory_space<vmem>>, vector<1x64x64xf32>
    %3 = vector.shape_cast %2 : vector<1x64x64xf32> to vector<64x64xf32>
    %4 = vector.extract_strided_slice %3 {offsets = [0, 0], sizes = [64, 1], strides = [1, 1]} : vector<64x64xf32> to vector<64x1xf32>
    %5 = vector.extract_strided_slice %4 {offsets = [0, 0], sizes = [32, 1], strides = [1, 1]} : vector<64x1xf32> to vector<32x1xf32>
    %6 = vector.extract_strided_slice %4 {offsets = [32, 0], sizes = [32, 1], strides = [1, 1]} : vector<64x1xf32> to vector<32x1xf32>
    %7 = vector.broadcast %5 : vector<32x1xf32> to vector<32x128xf32>
    %8 = arith.mulf %7, %0 : vector<32x128xf32>
    %9 = vector.broadcast %6 : vector<32x1xf32> to vector<32x128xf32>
    %10 = arith.mulf %9, %1 : vector<32x128xf32>
    %11 = arith.subf %8, %10 : vector<32x128xf32>
    %12 = vector.broadcast %5 : vector<32x1xf32> to vector<32x128xf32>
    %13 = arith.mulf %12, %1 : vector<32x128xf32>
    %14 = vector.broadcast %6 : vector<32x1xf32> to vector<32x128xf32>
    %15 = arith.mulf %14, %0 : vector<32x128xf32>
    %16 = arith.addf %13, %15 : vector<32x128xf32>
    %c1 = arith.constant 1 : index
    %c0_5 = arith.constant 0 : index
    %c0_6 = arith.constant 0 : index
    %17 = vector.load %arg1[%c1, %c0_5, %c0_6] : memref<4x64x64xf32, #tpu.memory_space<vmem>>, vector<1x64x64xf32>
    %18 = vector.shape_cast %17 : vector<1x64x64xf32> to vector<64x64xf32>
    %19 = tpu.concatenate %11, %16 in 0 : vector<32x128xf32>, vector<32x128xf32> -> vector<64x128xf32>
    %cst = arith.constant dense<0.000000e+00> : vector<64x128xf32>
    %20 = tpu.matmul %18, %19, %cst {dimension_numbers = #tpu.dot_dimension_numbers<[1], [0], [0], [1], [0, 0, 1, 1], [], []>} : vector<64x64xf32>, vector<64x128xf32>, vector<64x128xf32> -> vector<64x128xf32>
    %21 = vector.extract_strided_slice %20 {offsets = [0, 0], sizes = [32, 128], strides = [1, 1]} : vector<64x128xf32> to vector<32x128xf32>
    %22 = vector.extract_strided_slice %20 {offsets = [32, 0], sizes = [32, 128], strides = [1, 1]} : vector<64x128xf32> to vector<32x128xf32>
    %23 = arith.mulf %21, %0 : vector<32x128xf32>
    %24 = arith.mulf %22, %1 : vector<32x128xf32>
    %25 = arith.subf %23, %24 : vector<32x128xf32>
    %26 = arith.mulf %21, %1 : vector<32x128xf32>
    %27 = arith.mulf %22, %0 : vector<32x128xf32>
    %28 = arith.addf %26, %27 : vector<32x128xf32>
    %c2 = arith.constant 2 : index
    %c0_7 = arith.constant 0 : index
    %c0_8 = arith.constant 0 : index
    %29 = vector.load %arg1[%c2, %c0_7, %c0_8] : memref<4x64x64xf32, #tpu.memory_space<vmem>>, vector<1x64x64xf32>
    %30 = vector.shape_cast %29 : vector<1x64x64xf32> to vector<64x64xf32>
    %31 = tpu.concatenate %25, %28 in 0 : vector<32x128xf32>, vector<32x128xf32> -> vector<64x128xf32>
    %cst_9 = arith.constant dense<0.000000e+00> : vector<64x128xf32>
    %32 = tpu.matmul %30, %31, %cst_9 {dimension_numbers = #tpu.dot_dimension_numbers<[1], [0], [0], [1], [0, 0, 1, 1], [], []>} : vector<64x64xf32>, vector<64x128xf32>, vector<64x128xf32> -> vector<64x128xf32>
    %33 = vector.extract_strided_slice %32 {offsets = [0, 0], sizes = [32, 128], strides = [1, 1]} : vector<64x128xf32> to vector<32x128xf32>
    %34 = vector.extract_strided_slice %32 {offsets = [32, 0], sizes = [32, 128], strides = [1, 1]} : vector<64x128xf32> to vector<32x128xf32>
    %35 = arith.mulf %33, %0 : vector<32x128xf32>
    %36 = arith.mulf %34, %1 : vector<32x128xf32>
    %37 = arith.subf %35, %36 : vector<32x128xf32>
    %38 = arith.mulf %33, %1 : vector<32x128xf32>
    %39 = arith.mulf %34, %0 : vector<32x128xf32>
    %40 = arith.addf %38, %39 : vector<32x128xf32>
    %c3 = arith.constant 3 : index
    %c0_10 = arith.constant 0 : index
    %c0_11 = arith.constant 0 : index
    %41 = vector.load %arg1[%c3, %c0_10, %c0_11] : memref<4x64x64xf32, #tpu.memory_space<vmem>>, vector<1x64x64xf32>
    %42 = vector.shape_cast %41 : vector<1x64x64xf32> to vector<64x64xf32>
    %43 = tpu.concatenate %37, %40 in 0 : vector<32x128xf32>, vector<32x128xf32> -> vector<64x128xf32>
    %cst_12 = arith.constant dense<0.000000e+00> : vector<64x128xf32>
    %44 = tpu.matmul %42, %43, %cst_12 {dimension_numbers = #tpu.dot_dimension_numbers<[1], [0], [0], [1], [0, 0, 1, 1], [], []>} : vector<64x64xf32>, vector<64x128xf32>, vector<64x128xf32> -> vector<64x128xf32>
    %45 = vector.extract_strided_slice %44 {offsets = [0, 0], sizes = [32, 128], strides = [1, 1]} : vector<64x128xf32> to vector<32x128xf32>
    %46 = vector.extract_strided_slice %44 {offsets = [32, 0], sizes = [32, 128], strides = [1, 1]} : vector<64x128xf32> to vector<32x128xf32>
    %47 = arith.mulf %45, %45 : vector<32x128xf32>
    %48 = arith.mulf %46, %46 : vector<32x128xf32>
    %49 = arith.addf %47, %48 : vector<32x128xf32>
    %50 = vector.extract_strided_slice %49 {offsets = [0, 0], sizes = [16, 128], strides = [1, 1]} : vector<32x128xf32> to vector<16x128xf32>
    %cst_13 = arith.constant dense<0.000000e+00> : vector<128xf32>
    %51 = vector.multi_reduction <add>, %50, %cst_13 [0] : vector<16x128xf32> to vector<128xf32>
    %52 = vector.shape_cast %51 : vector<128xf32> to vector<1x128xf32>
    %53 = vector.extract_strided_slice %49 {offsets = [16, 0], sizes = [16, 128], strides = [1, 1]} : vector<32x128xf32> to vector<16x128xf32>
    %cst_14 = arith.constant dense<0.000000e+00> : vector<128xf32>
    %54 = vector.multi_reduction <add>, %53, %cst_14 [0] : vector<16x128xf32> to vector<128xf32>
    %55 = vector.shape_cast %54 : vector<128xf32> to vector<1x128xf32>
    %56 = arith.subf %52, %55 : vector<1x128xf32>
    %c0_15 = arith.constant 0 : index
    %c0_16 = arith.constant 0 : index
    %57 = vector.load %arg3[%c0_15, %c0_16] : memref<1x128xf32, #tpu.memory_space<vmem>>, vector<1x128xf32>
    tpu.vector_store %arg3[%c0_15, %c0_16], %56 {strides = array<i32>} : memref<1x128xf32, #tpu.memory_space<vmem>>, vector<1x128xf32>,
    return
  }
  func.func @transform_0(%arg0: i32) -> (i32, i32, i32) {
    %c0_i32 = arith.constant 0 : i32
    %c0_i32_0 = arith.constant 0 : i32
    %c0_i32_1 = arith.constant 0 : i32
    %c0_i32_2 = arith.constant 0 : i32
    return %c0_i32, %c0_i32_0, %c0_i32_1 : i32, i32, i32
  }
  func.func @transform_1(%arg0: i32) -> (i32, i32) {
    %c0_i32 = arith.constant 0 : i32
    %c0_i32_0 = arith.constant 0 : i32
    return %c0_i32, %arg0 : i32, i32
  }
  func.func @transform_2(%arg0: i32) -> (i32, i32) {
    %c0_i32 = arith.constant 0 : i32
    %c0_i32_0 = arith.constant 0 : i32
    return %c0_i32, %arg0 : i32, i32
  }
}

</mosaic_0001>

<bundles_post_ra>
// kernel: tpu_custom_call.1
= control target key start
LH: loop header
LB: loop body
LE: loop exit
PB: predicated region body
PF: predicated region fallthrough
CT: control target
= control target key end

     0   :  { %7 = vsyncpa [#allocation3], 0  ;;  %s991_s0 = inlined_call_operand.hbm [shape: f32[4,64,64], index: 0, kind: input, shape index: {}]   ;;  %s992_s1 = inlined_call_operand.hbm [shape: f32[64,128], index: 1, kind: input, shape index: {}]   ;;  %s993_s2 = inlined_call_operand.hbm [shape: f32[1,128], index: 2, kind: output, shape index: {}]  }
   0x1   :  { %8 = vsyncpa [#allocation6], 0 }
   0x2   :  { %9 = vsyncpa [#allocation4], 0  ;;  %s873_s9 = smov [#allocation2]  }
   0x3   :  { %s15_s10 = sshll.u32 %s873_s9, 4  ;;  %s16_s10 = int_to_ptr.vmem [resolvable:$true] %s15_s10 }
   0x4   :  { %s815_s11 = scalar_lea.vmem %s16_s10, 4096  ;;  %p820_p1 = scmp.lt.s32.totalorder %s16_s10, %s16_s10 }
   0x5   :  { %p816_p0 = scmp.ne.s32.totalorder %s16_s10, %s815_s11  ;;  %p821_p2 = scmp.lt.s32.totalorder %s815_s11, %s815_s11 }
   0x7   :  { %p822_p3 = por %p821_p2, %p820_p1 }
   0x9   :  { %p823_p4 = pnand %p822_p3, %p816_p0 }
   0xb   :  { %826 = shalt.err (!%p823_p4)
}
   0xc   :  { %s874_s12 = smov 128   ;;  %s875_s13 = smov 8  }
   0xd   :  { %21 = dma.hbm_to_vmem [thread:$0]  %s991_s0, 4096, %s16_s10, [#allocation3], %s874_s12, %s874_s12, %s875_s13  }
   0xe   :  { %s876_s16 = smov [#allocation5]  }
   0xf   :  { %s27_s17 = sshll.u32 %s876_s16, 4  ;;  %s28_s17 = int_to_ptr.vmem [resolvable:$true] %s27_s17 }
  0x10   :  { %s835_s18 = scalar_lea.vmem %s28_s17, 1024  ;;  %p840_p6 = scmp.lt.s32.totalorder %s28_s17, %s28_s17 }
  0x11   :  { %p836_p5 = scmp.ne.s32.totalorder %s28_s17, %s835_s18  ;;  %p841_p7 = scmp.lt.s32.totalorder %s835_s18, %s835_s18 }
  0x13   :  { %p842_p8 = por %p841_p7, %p840_p6 }
  0x15   :  { %p843_p9 = pnand %p842_p8, %p836_p5 }
  0x17   :  { %846 = shalt.err (!%p843_p9)
}
  0x18   :  { %33 = dma.hbm_to_vmem [thread:$0]  %s992_s1, 1024, %s28_s17, [#allocation6], %s874_s12, %s874_s12, %s875_s13  }
  0x19   :  { %867 = dma.done.wait [#allocation3], 4096  }
  0x1a   :  { %868 = vsyncadd [#allocation3], 4294963200 }
  0x1b   :  { %869 = dma.done.wait [#allocation6], 1024  }
  0x1c   :  { %870 = vsyncadd [#allocation6], 4294966272  ;;  %v877_v0 = vmov 0   ;;  %v51_v1 = vld [vmem:[#allocation2 + $0x18] sm:$0xff]  ;;  %v50_v2 = vld [vmem:[#allocation2 + $0x10] sm:$0xff]  ;;  %vm129_vm0 = vcmask 523264  }
  0x1d   :  { %806 = vset.pattern.permute.xlu1 %v877_v0  ;;  %805 = vset.pattern.permute.xlu0 %v877_v0  ;;  %v55_v3 = vld [vmem:[#allocation2 + $0x38] sm:$0xff]  ;;  %v54_v4 = vld [vmem:[#allocation2 + $0x30] sm:$0xff]  ;;  %v53_v5 = vld [vmem:[#allocation2 + $0x28] sm:$0xff]  ;;  %s878_s0 = smov [#allocation7]  }
  0x1e   :  { %73 = vperm.xlu0 %805, %v51_v1   ;;  %68 = vperm.xlu1 %806, %v50_v2   ;;  %v49_v6 = vld [vmem:[#allocation2 + $0x8] sm:$0xff]  ;;  %v52_v7 = vld [vmem:[#allocation2 + $0x20] sm:$0xff]  ;;  %v901_v12 = vld [vmem:[#allocation5 + $0x38] sm:$0xff]  ;;  %s617_s1 = sshll.u32 %s878_s0, 4  ;;  %s618_s1 = int_to_ptr.vmem [resolvable:$true] %s617_s1 }
  0x1f   :  { %v48_v8 = vld [vmem:[#allocation2] sm:$0xff]  ;;  %v903_v13 = vld [vmem:[#allocation5 + $0x18] sm:$0xff]  ;;  %v905_v14 = vld [vmem:[#allocation5 + $0x10] sm:$0xff]  ;;  %s847_s21 = scalar_lea.vmem %s618_s1, 16  ;;  %s851_s22 = scalar_lea.vmem %s618_s1, 32 }
  0x20   :  { %v121_v9 = vld [vmem:[#allocation2 + $0x40] sm:$0xff]  ;;  %v907_v15 = vld [vmem:[#allocation5 + $0x30] sm:$0xff]  ;;  %v912_v21 = vld [vmem:[#allocation5 + $0x8] sm:$0xff]  ;;  %p848_p10 = scmp.ne.s32.totalorder %s618_s1, %s847_s21  ;;  %p852_p11 = scmp.lt.s32.totalorder %s618_s1, %s618_s1 }
  0x21   :  { %715 = vmatprep.mubr.msk.f32.mxu0 %vm129_vm0, %v121_v9  ;;  %v914_v22 = vld [vmem:[#allocation5 + $0x28] sm:$0xff]  ;;  %v919_v30 = vld [vmem:[#allocation5] sm:$0xff]  ;;  %v123_v51 = vld [vmem:[#allocation2 + $0x50] sm:$0xff]  ;;  %p853_p12 = scmp.lt.s32.totalorder %s851_s22, %s847_s21 }
  0x22   :  { %97 = vperm.xlu0 %805, %v55_v3   ;;  %92 = vperm.xlu1 %806, %v54_v4   ;;  %v921_v31 = vld [vmem:[#allocation5 + $0x20] sm:$0xff]  ;;  %v122_v50 = vld [vmem:[#allocation2 + $0x48] sm:$0xff]  ;;  %v124_v52 = vld [vmem:[#allocation2 + $0x58] sm:$0xff] }
  0x23   :  { %v125_v53 = vld [vmem:[#allocation2 + $0x60] sm:$0xff]  ;;  %v126_v54 = vld [vmem:[#allocation2 + $0x68] sm:$0xff]  ;;  %v127_v55 = vld [vmem:[#allocation2 + $0x70] sm:$0xff]  ;;  %p854_p13 = por %p853_p12, %p852_p11 }
  0x24   :  { %v128_v56 = vld [vmem:[#allocation2 + $0x78] sm:$0xff]  ;;  %v284_v57 = vld [vmem:[#allocation2 + $0x80] sm:$0xff] }
  0x25   :  { %743 = vmatprep.mubr.msk.f32.mxu1 %vm129_vm0, %v284_v57  ;;  %p855_p0 = pnand %p854_p13, %p848_p10 }
  0x26   :  { %87 = vperm.xlu1 %806, %v53_v5   ;;  %63 = vperm.xlu0 %805, %v49_v6  }
  0x2a   :  { %82 = vperm.xlu1 %806, %v52_v7   ;;  %58 = vperm.xlu0 %805, %v48_v8  }
  0x99   :  { %v74_v10 = vpop.permute.xlu0 %73  ;;  %v69_v11 = vpop.permute.xlu1 %68 }
  0x9a   :  { %v111_v18 = vmul.f32 %v74_v10, %v901_v12  ;;  %v110_v23 = vmul.f32 %v69_v11, %v907_v15  ;;  %v79_v38 = vmul.f32 %v74_v10, %v903_v13  ;;  %v78_v41 = vmul.f32 %v69_v11, %v905_v14 }
  0x9d   :  { %v98_v16 = vpop.permute.xlu0 %97  ;;  %v93_v17 = vpop.permute.xlu1 %92 }
  0x9e   :  { %v115_v19 = vmul.f32 %v98_v16, %v903_v13  ;;  %v114_v20 = vmul.f32 %v93_v17, %v905_v14  ;;  %v103_v35 = vmul.f32 %v98_v16, %v901_v12  ;;  %v102_v39 = vmul.f32 %v93_v17, %v907_v15 }
  0xa0   :  { %v119_v24 = vadd.f32 %v115_v19, %v111_v18  ;;  %v118_v27 = vadd.f32 %v114_v20, %v110_v23  ;;  %v107_v42 = vsub.f32 %v79_v38, %v103_v35  ;;  %v106_v45 = vsub.f32 %v78_v41, %v102_v39  ;;  %v286_v35 = vld [vmem:[#allocation2 + $0x90] sm:$0xff]  ;;  %v289_v38 = vld [vmem:[#allocation2 + $0xa8] sm:$0xff]  ;;  %v446_v41 = vld [vmem:[#allocation2 + $0xc0] sm:$0xff] }
  0xa1   :  { %v88_v25 = vpop.permute.xlu1 %87  ;;  %v64_v26 = vpop.permute.xlu0 %63  ;;  %v290_v39 = vld [vmem:[#allocation2 + $0xb0] sm:$0xff] }
  0xa2   :  { %v113_v28 = vmul.f32 %v88_v25, %v912_v21  ;;  %v109_v29 = vmul.f32 %v64_v26, %v914_v22  ;;  %699 = vmatprep.subr.mxu0 %v119_v24  ;;  %v101_v43 = vmul.f32 %v88_v25, %v914_v22  ;;  %v77_v44 = vmul.f32 %v64_v26, %v912_v21 }
  0xa3   :  { %700 = vmatpush3.msra.mxu0 %v119_v24 }
  0xa4   :  { %v117_v32 = vadd.f32 %v113_v28, %v109_v29  ;;  %701 = vmatprep.subr.mxu0 %v118_v27  ;;  %v105_v48 = vsub.f32 %v77_v44, %v101_v43 }
  0xa5   :  { %v83_v33 = vpop.permute.xlu1 %82  ;;  %v59_v34 = vpop.permute.xlu0 %58  ;;  %702 = vmatpush3.msra.mxu0 %v118_v27 }
  0xa6   :  { %v112_v36 = vmul.f32 %v83_v33, %v919_v30  ;;  %v108_v37 = vmul.f32 %v59_v34, %v921_v31  ;;  %703 = vmatprep.subr.mxu0 %v117_v32  ;;  %v100_v46 = vmul.f32 %v83_v33, %v921_v31  ;;  %v76_v47 = vmul.f32 %v59_v34, %v919_v30  ;;  %v285_v34 = vld [vmem:[#allocation2 + $0x88] sm:$0xff] }
  0xa7   :  { %704 = vmatpush3.msra.mxu0 %v117_v32 }
  0xa8   :  { %v116_v40 = vadd.f32 %v112_v36, %v108_v37  ;;  %v104_v49 = vsub.f32 %v76_v47, %v100_v46  ;;  %v287_v36 = vld [vmem:[#allocation2 + $0x98] sm:$0xff]  ;;  %v288_v37 = vld [vmem:[#allocation2 + $0xa0] sm:$0xff] }
  0xaa   :  { %705 = vmatprep.subr.mxu0 %v116_v40 }
  0xab   :  { %706 = vmatpush3.msra.mxu0 %v116_v40  ;;  %v291_v40 = vld [vmem:[#allocation2 + $0xb8] sm:$0xff] }
  0xac   :  { %707 = vmatprep.subr.mxu0 %v107_v42 }
  0xad   :  { %708 = vmatpush3.msra.mxu0 %v107_v42  ;;  %v450_v42 = vld [vmem:[#allocation2 + $0xe0] sm:$0xff] }
  0xae   :  { %709 = vmatprep.subr.mxu0 %v106_v45 }
  0xaf   :  { %710 = vmatpush3.msra.mxu0 %v106_v45 }
  0xb0   :  { %711 = vmatprep.subr.mxu0 %v105_v48 }
  0xb1   :  { %712 = vmatpush3.msra.mxu0 %v105_v48 }
  0xb2   :  { %713 = vmatprep.subr.mxu0 %v104_v49 }
  0xb3   :  { %714 = vmatpush3.msra.mxu0 %v104_v49 }
  0xb4   :  { %716 = vmatmul.mubr.msk.f32.vlgmr.msra.gmra.mxu0 %vm129_vm0, %v122_v50 }
  0xb5   :  { %718 = vmatprep.mubr.msk.f32.mxu0 %vm129_vm0, %v123_v51 }
  0xb8   :  { %719 = vmatmul.mubr.msk.f32.gmra.mxu0 %vm129_vm0, %v124_v52 }
  0xb9   :  { %721 = vmatprep.mubr.msk.f32.mxu0 %vm129_vm0, %v125_v53 }
  0xbc   :  { %722 = vmatmul.mubr.msk.f32.gmra.mxu0 %vm129_vm0, %v126_v54 }
  0xbd   :  { %724 = vmatprep.mubr.msk.f32.mxu0 %vm129_vm0, %v127_v55 }
  0xc0   :  { %725 = vmatmul.mubr.msk.f32.gmra.mxu0 %vm129_vm0, %v128_v56 }
  0xc1   :  { %771 = vmatprep.mubr.msk.f32.mxu0 %vm129_vm0, %v446_v41 }
 0x174   :  { %v717_v58 = vpop.f32.mrf.mxu0 }
 0x175   :  { %v272_v8 = vmul.f32 %v717_v58, %v914_v22  ;;  %v260_v26 = vmul.f32 %v717_v58, %v912_v21 }
 0x176   :  { %v220_v59 = vpop.f32.mrf.mxu0 }
 0x177   :  { %v271_v11 = vmul.f32 %v220_v59, %v921_v31  ;;  %v259_v29 = vmul.f32 %v220_v59, %v919_v30 }
 0x178   :  { %v720_v60 = vpop.f32.mrf.mxu0 }
 0x179   :  { %v274_v1 = vmul.f32 %v720_v60, %v901_v12  ;;  %v262_v18 = vmul.f32 %v720_v60, %v903_v13 }
 0x17a   :  { %v230_v61 = vpop.f32.mrf.mxu0 }
 0x17b   :  { %v273_v4 = vmul.f32 %v230_v61, %v907_v15  ;;  %v261_v23 = vmul.f32 %v230_v61, %v905_v14 }
 0x17c   :  { %v723_v62 = vpop.f32.mrf.mxu0 }
 0x17d   :  { %v276_v5 = vmul.f32 %v723_v62, %v912_v21  ;;  %v264_v24 = vmul.f32 %v723_v62, %v914_v22 }
 0x17e   :  { %v240_v63 = vpop.f32.mrf.mxu0 }
 0x17f   :  { %v275_v9 = vmul.f32 %v240_v63, %v919_v30  ;;  %v280_v16 = vadd.f32 %v276_v5, %v272_v8  ;;  %v263_v27 = vmul.f32 %v240_v63, %v921_v31  ;;  %v268_v32 = vsub.f32 %v260_v26, %v264_v24  ;;  %v453_v8 = vld [vmem:[#allocation2 + $0xf8] sm:$0xff] }
 0x180   :  { %v726_v0 = vpop.f32.mrf.mxu0 }
 0x181   :  { %v278_v2 = vmul.f32 %v726_v0, %v903_v13  ;;  %v266_v17 = vmul.f32 %v726_v0, %v901_v12  ;;  %v279_v19 = vadd.f32 %v275_v9, %v271_v11  ;;  %v267_v33 = vsub.f32 %v259_v29, %v263_v27 }
 0x182   :  { %v250_v3 = vpop.f32.mrf.mxu0 }
 0x183   :  { %v277_v6 = vmul.f32 %v250_v3, %v905_v14  ;;  %v282_v7 = vadd.f32 %v278_v2, %v274_v1  ;;  %v265_v20 = vmul.f32 %v250_v3, %v907_v15  ;;  %v270_v25 = vsub.f32 %v262_v18, %v266_v17 }
 0x185   :  { %v281_v10 = vadd.f32 %v277_v6, %v273_v4  ;;  %727 = vmatprep.subr.mxu1 %v282_v7  ;;  %v269_v28 = vsub.f32 %v261_v23, %v265_v20 }
 0x186   :  { %728 = vmatpush3.msra.mxu1 %v282_v7  ;;  %v452_v7 = vld [vmem:[#allocation2 + $0xf0] sm:$0xff] }
 0x187   :  { %729 = vmatprep.subr.mxu1 %v281_v10 }
 0x188   :  { %730 = vmatpush3.msra.mxu1 %v281_v10 }
 0x189   :  { %731 = vmatprep.subr.mxu1 %v280_v16 }
 0x18a   :  { %732 = vmatpush3.msra.mxu1 %v280_v16 }
 0x18b   :  { %733 = vmatprep.subr.mxu1 %v279_v19 }
 0x18c   :  { %734 = vmatpush3.msra.mxu1 %v279_v19 }
 0x18d   :  { %735 = vmatprep.subr.mxu1 %v270_v25 }
 0x18e   :  { %736 = vmatpush3.msra.mxu1 %v270_v25 }
 0x18f   :  { %737 = vmatprep.subr.mxu1 %v269_v28 }
 0x190   :  { %738 = vmatpush3.msra.mxu1 %v269_v28 }
 0x191   :  { %739 = vmatprep.subr.mxu1 %v268_v32 }
 0x192   :  { %740 = vmatpush3.msra.mxu1 %v268_v32 }
 0x193   :  { %741 = vmatprep.subr.mxu1 %v267_v33 }
 0x194   :  { %742 = vmatpush3.msra.mxu1 %v267_v33 }
 0x195   :  { %744 = vmatmul.mubr.msk.f32.vlgmr.msra.gmra.mxu1 %vm129_vm0, %v285_v34 }
 0x196   :  { %746 = vmatprep.mubr.msk.f32.mxu1 %vm129_vm0, %v286_v35 }
 0x199   :  { %747 = vmatmul.mubr.msk.f32.gmra.mxu1 %vm129_vm0, %v287_v36 }
 0x19a   :  { %749 = vmatprep.mubr.msk.f32.mxu1 %vm129_vm0, %v288_v37 }
 0x19d   :  { %750 = vmatmul.mubr.msk.f32.gmra.mxu1 %vm129_vm0, %v289_v38 }
 0x19e   :  { %752 = vmatprep.mubr.msk.f32.mxu1 %vm129_vm0, %v290_v39 }
 0x1a1   :  { %753 = vmatmul.mubr.msk.f32.gmra.mxu1 %vm129_vm0, %v291_v40 }
 0x1a2   :  { %777 = vmatprep.mubr.msk.f32.mxu1 %vm129_vm0, %v450_v42 }
 0x255   :  { %v745_v43 = vpop.f32.mrf.mxu1 }
 0x256   :  { %v434_v57 = vmul.f32 %v745_v43, %v914_v22 }
 0x257   :  { %v382_v44 = vpop.f32.mrf.mxu1 }
 0x258   :  { %v433_v60 = vmul.f32 %v382_v44, %v921_v31 }
 0x259   :  { %v748_v45 = vpop.f32.mrf.mxu1 }
 0x25a   :  { %v436_v50 = vmul.f32 %v748_v45, %v901_v12  ;;  %v424_v63 = vmul.f32 %v748_v45, %v903_v13 }
 0x25b   :  { %v392_v46 = vpop.f32.mrf.mxu1 }
 0x25c   :  { %v435_v53 = vmul.f32 %v392_v46, %v907_v15  ;;  %v423_v2 = vmul.f32 %v392_v46, %v905_v14 }
 0x25d   :  { %v751_v47 = vpop.f32.mrf.mxu1 }
 0x25e   :  { %v438_v54 = vmul.f32 %v751_v47, %v912_v21  ;;  %v426_v3 = vmul.f32 %v751_v47, %v914_v22  ;;  %v451_v22 = vld [vmem:[#allocation2 + $0xe8] sm:$0xff] }
 0x25f   :  { %v402_v48 = vpop.f32.mrf.mxu1 }
 0x260   :  { %v437_v58 = vmul.f32 %v402_v48, %v919_v30  ;;  %v442_v61 = vadd.f32 %v438_v54, %v434_v57 }
 0x261   :  { %v754_v49 = vpop.f32.mrf.mxu1 }
 0x262   :  { %v440_v51 = vmul.f32 %v754_v49, %v903_v13  ;;  %v428_v62 = vmul.f32 %v754_v49, %v901_v12  ;;  %v441_v0 = vadd.f32 %v437_v58, %v433_v60  ;;  %v422_v12 = vmul.f32 %v745_v43, %v912_v21  ;;  %v447_v21 = vld [vmem:[#allocation2 + $0xc8] sm:$0xff] }
 0x263   :  { %v412_v52 = vpop.f32.mrf.mxu1  ;;  %v425_v13 = vmul.f32 %v402_v48, %v921_v31  ;;  %v448_v31 = vld [vmem:[#allocation2 + $0xd0] sm:$0xff] }
 0x264   :  { %v444_v55 = vadd.f32 %v440_v51, %v436_v50  ;;  %v439_v56 = vmul.f32 %v412_v52, %v905_v14  ;;  %v427_v1 = vmul.f32 %v412_v52, %v907_v15  ;;  %v432_v4 = vsub.f32 %v424_v63, %v428_v62 }
 0x265   :  { %v421_v15 = vmul.f32 %v382_v44, %v919_v30  ;;  %v430_v6 = vsub.f32 %v422_v12, %v426_v3  ;;  %v449_v30 = vld [vmem:[#allocation2 + $0xd8] sm:$0xff] }
 0x266   :  { %v443_v59 = vadd.f32 %v439_v56, %v435_v53  ;;  %755 = vmatprep.subr.mxu0 %v444_v55  ;;  %783 = vmatprep.subr.mxu1 %v444_v55  ;;  %v431_v5 = vsub.f32 %v423_v2, %v427_v1 }
 0x267   :  { %756 = vmatpush3.msra.mxu0 %v444_v55  ;;  %791 = vmatpush3.msra.mxu1 %v444_v55  ;;  %v429_v14 = vsub.f32 %v421_v15, %v425_v13 }
 0x268   :  { %757 = vmatprep.subr.mxu0 %v443_v59  ;;  %784 = vmatprep.subr.mxu1 %v443_v59 }
 0x269   :  { %758 = vmatpush3.msra.mxu0 %v443_v59  ;;  %792 = vmatpush3.msra.mxu1 %v443_v59 }
 0x26a   :  { %759 = vmatprep.subr.mxu0 %v442_v61  ;;  %785 = vmatprep.subr.mxu1 %v442_v61 }
 0x26b   :  { %760 = vmatpush3.msra.mxu0 %v442_v61  ;;  %793 = vmatpush3.msra.mxu1 %v442_v61 }
 0x26c   :  { %761 = vmatprep.subr.mxu0 %v441_v0  ;;  %786 = vmatprep.subr.mxu1 %v441_v0 }
 0x26d   :  { %762 = vmatpush3.msra.mxu0 %v441_v0  ;;  %794 = vmatpush3.msra.mxu1 %v441_v0 }
 0x26e   :  { %763 = vmatprep.subr.mxu0 %v432_v4  ;;  %787 = vmatprep.subr.mxu1 %v432_v4 }
 0x26f   :  { %764 = vmatpush3.msra.mxu0 %v432_v4  ;;  %795 = vmatpush3.msra.mxu1 %v432_v4 }
 0x270   :  { %765 = vmatprep.subr.mxu0 %v431_v5  ;;  %788 = vmatprep.subr.mxu1 %v431_v5 }
 0x271   :  { %766 = vmatpush3.msra.mxu0 %v431_v5  ;;  %796 = vmatpush3.msra.mxu1 %v431_v5 }
 0x272   :  { %767 = vmatprep.subr.mxu0 %v430_v6  ;;  %789 = vmatprep.subr.mxu1 %v430_v6 }
 0x273   :  { %768 = vmatpush3.msra.mxu0 %v430_v6  ;;  %797 = vmatpush3.msra.mxu1 %v430_v6 }
 0x274   :  { %769 = vmatprep.subr.mxu0 %v429_v14  ;;  %790 = vmatprep.subr.mxu1 %v429_v14 }
 0x275   :  { %770 = vmatpush3.msra.mxu0 %v429_v14  ;;  %798 = vmatpush3.msra.mxu1 %v429_v14 }
 0x276   :  { %772 = vmatmul.mubr.msk.f32.vlgmr.msra.gmra.mxu0 %vm129_vm0, %v447_v21  ;;  %778 = vmatmul.mubr.msk.f32.vlgmr.msra.gmra.mxu1 %vm129_vm0, %v451_v22 }
 0x277   :  { %774 = vmatprep.mubr.msk.f32.mxu0 %vm129_vm0, %v448_v31  ;;  %780 = vmatprep.mubr.msk.f32.mxu1 %vm129_vm0, %v452_v7 }
 0x27a   :  { %775 = vmatmul.mubr.msk.f32.gmra.mxu0 %vm129_vm0, %v449_v30  ;;  %781 = vmatmul.mubr.msk.f32.gmra.mxu1 %vm129_vm0, %v453_v8 }
 0x336   :  { %v773_v9 = vpop.f32.mrf.mxu0  ;;  %v779_v10 = vpop.f32.mrf.mxu1 }
 0x337   :  { %v584_v11 = vmul.f32 %v773_v9, %v773_v9  ;;  %v588_v16 = vmul.f32 %v779_v10, %v779_v10 }
 0x338   :  { %v544_v17 = vpop.f32.mrf.mxu0  ;;  %v564_v18 = vpop.f32.mrf.mxu1 }
 0x339   :  { %v583_v19 = vmul.f32 %v544_v17, %v544_v17  ;;  %v587_v20 = vmul.f32 %v564_v18, %v564_v18  ;;  %v592_v25 = vadd.f32 %v588_v16, %v584_v11 }
 0x33a   :  { %v776_v23 = vpop.f32.mrf.mxu0  ;;  %v782_v24 = vpop.f32.mrf.mxu1 }
 0x33b   :  { %v591_v26 = vadd.f32 %v587_v20, %v583_v19  ;;  %v586_v27 = vmul.f32 %v776_v23, %v776_v23  ;;  %v590_v28 = vmul.f32 %v782_v24, %v782_v24 }
 0x33c   :  { %v554_v29 = vpop.f32.mrf.mxu0  ;;  %v574_v32 = vpop.f32.mrf.mxu1 }
 0x33d   :  { %v595_v33 = vadd.f32 %v592_v25, %v591_v26  ;;  %v585_v34 = vmul.f32 %v554_v29, %v554_v29  ;;  %v589_v35 = vmul.f32 %v574_v32, %v574_v32  ;;  %v594_v37 = vadd.f32 %v590_v28, %v586_v27 }
 0x33f   :  { %v596_v36 = vrot.slane %v595_v33, 4  ;;  %v593_v38 = vadd.f32 %v589_v35, %v585_v34 }
 0x341   :  { %v597_v39 = vadd.f32 %v596_v36, %v595_v33  ;;  %v602_v40 = vadd.f32 %v594_v37, %v593_v38 }
 0x343   :  { %v598_v41 = vrot.slane %v597_v39, 2  ;;  %v603_v42 = vrot.slane %v602_v40, 4 }
 0x345   :  { %v604_v43 = vadd.f32 %v603_v42, %v602_v40  ;;  %v599_v44 = vadd.f32 %v598_v41, %v597_v39 }
 0x347   :  { %v605_v45 = vrot.slane %v604_v43, 2  ;;  %v600_v46 = vrot.slane %v599_v44, 1 }
 0x349   :  { %v606_v47 = vadd.f32 %v605_v45, %v604_v43  ;;  %v601_v49 = vadd.f32 %v600_v46, %v599_v44 }
 0x34b   :  { %v607_v48 = vrot.slane %v606_v47, 1 }
 0x34d   :  { %v608_v50 = vadd.f32 %v607_v48, %v606_v47 }
 0x34f   :  { %v609_v51 = vsub.f32 %v601_v49, %v608_v50 }
 0x351   :  { %610 = vst [vmem:[#allocation7] sm:$0x1] %v609_v51 }
 0x352   :  { %858 = shalt.err (!%p855_p0)
}
 0x353   :  { %620 = dma.vmem_to_hbm [thread:$0]  %s618_s1, 16, %s993_s2, [#allocation4]  }
 0x354   :  { %871 = dma.done.wait [#allocation4], 16  }
 0x355   :  { %872 = vsyncadd [#allocation4], 4294967280 }
 0x356   :  { %624 = vsyncpa [#allocation3], 1 }
 0x357   :  { %625 = vsyncpa [#allocation6], 1 }
 0x358   :  { %626 = vsyncpa [#allocation4], 1 }

</bundles_post_ra>
